<compile_context>
chip_gen: v5e
topology: v5e:2x2
jax: 0.10.0
libtpu: 0.0.40
codegen_flags: <defaults>
</compile_context>

<pallas_src>
import functools

import jax
import jax.numpy as jnp
from jax.experimental import pallas as pl
from jax.experimental.pallas import tpu as pltpu

LN_EPS = 1e-5          # torch.nn.LayerNorm default
LEAKY_SLOPE = 0.05     # negative_slope in the module
OUT_PAD = 128          # lane-dense padded width of the final layer (>= 51)
TB_CAP = 512           # max batch-tile rows


def _round_up(n, m):
    return ((n + m - 1) // m) * m


def _sublane_align(dtype):
    # Native sublane packing: 8 rows for 4-byte dtypes, 16 for 2-byte, 32 for 1-byte.
    return max(8, 32 // jnp.dtype(dtype).itemsize)


def _layernorm(h, gamma, beta):
    # One-pass biased variance (matches torch LayerNorm); clamp guards fp cancellation.
    mean = jnp.mean(h, axis=-1, keepdims=True)
    var = jnp.maximum(jnp.mean(h * h, axis=-1, keepdims=True) - mean * mean, 0.0)
    return (h - mean) * jax.lax.rsqrt(var + LN_EPS) * gamma + beta


def _leaky_relu(h):
    return jnp.where(h >= 0, h, LEAKY_SLOPE * h)


def sdnet_kernel(x_ref, w1_ref, p1_ref, w2_ref, p2_ref, w3_ref, b3_ref, o_ref):
    # p*_ref rows: 0 = linear bias, 1 = LN gamma, 2 = LN beta  (all f32)
    x = x_ref[...].astype(jnp.bfloat16)

    # Linear(512 -> 256) + LayerNorm(256) + LeakyReLU(0.05)
    h = jnp.dot(x, w1_ref[...], preferred_element_type=jnp.float32)
    h = h + p1_ref[0:1, :]
    h = _leaky_relu(_layernorm(h, p1_ref[1:2, :], p1_ref[2:3, :]))

    # Linear(256 -> 128) + LayerNorm(128) + LeakyReLU(0.05)
    h = jnp.dot(h.astype(jnp.bfloat16), w2_ref[...], preferred_element_type=jnp.float32)
    h = h + p2_ref[0:1, :]
    h = _leaky_relu(_layernorm(h, p2_ref[1:2, :], p2_ref[2:3, :]))

    # Linear(128 -> out_dim), zero-padded to 128 lanes for a dense store.
    y = jnp.dot(h.astype(jnp.bfloat16), w3_ref[...], preferred_element_type=jnp.float32)
    y = y + b3_ref[...]
    o_ref[...] = y.astype(o_ref.dtype)


@functools.partial(jax.jit, static_argnames=("out_dim",))
def sdnet_forward(x, params, out_dim):
    """x: (B, features_size), f32 or bf16. Returns (B, out_dim) f32."""
    w1, p1, w2, p2, w3p, b3p = params
    B, F = x.shape
    F1 = w1.shape[1]
    F2 = w2.shape[1]
    assert out_dim <= OUT_PAD, f"out_dim={out_dim} must be <= OUT_PAD={OUT_PAD}"

    # --- batch-tile planning (trace-time, static shapes) ---------------------
    sub = _sublane_align(x.dtype)
    if B >= 16:
        # >=2 steps so v7x's second TensorCore is used; aim for 4 once B >= ~256,
        # but keep tiles >= ~64 rows to amortize the ~0.35us per-step overhead.
        n_steps = max(2, min(4, pl.cdiv(B, 64)))
    else:
        n_steps = 1
    n_steps = max(n_steps, pl.cdiv(B, TB_CAP))
    TB = min(TB_CAP, _round_up(pl.cdiv(B, n_steps), sub))
    grid = (pl.cdiv(B, TB),)   # partial final block: Pallas clamps edge DMAs, no jnp.pad

    rows = grid[0] * TB
    flops = 2 * rows * (F * F1 + F1 * F2 + F2 * OUT_PAD)
    bytes_accessed = (
        rows * F * jnp.dtype(x.dtype).itemsize           # x in
        + (w1.size + w2.size + w3p.size) * 2              # bf16 weights
        + (p1.size + p2.size + b3p.size) * 4              # f32 small params
        + rows * OUT_PAD * 4                              # out
    )
    cost = pl.CostEstimate(flops=flops, transcendentals=2 * rows,
                           bytes_accessed=bytes_accessed)

    out = pl.pallas_call(
        sdnet_kernel,
        out_shape=jax.ShapeDtypeStruct((B, OUT_PAD), jnp.float32),
        grid_spec=pltpu.PrefetchScalarGridSpec(
            num_scalar_prefetch=0,
            grid=grid,
            in_specs=[
                pl.BlockSpec((TB, F), lambda i: (i, 0)),        # x tile (pipelined)
                pl.BlockSpec((F, F1), lambda i: (0, 0)),        # w1 (resident)
                pl.BlockSpec((3, F1), lambda i: (0, 0)),        # b1/g1/be1
                pl.BlockSpec((F1, F2), lambda i: (0, 0)),       # w2
                pl.BlockSpec((3, F2), lambda i: (0, 0)),        # b2/g2/be2
                pl.BlockSpec((F2, OUT_PAD), lambda i: (0, 0)),  # w3 (padded)
                pl.BlockSpec((1, OUT_PAD), lambda i: (0, 0)),   # b3 (padded)
            ],
            out_specs=pl.BlockSpec((TB, OUT_PAD), lambda i: (i, 0)),
        ),
        compiler_params=pltpu.CompilerParams(
            dimension_semantics=("parallel",),
            vmem_limit_bytes=32 * 1024 * 1024,
        ),
        cost_estimate=cost,
    )(x, w1, p1, w2, p2, w3p, b3p)

    return out[:, :out_dim]


def init_params(key, features_size=512, num_label_frames=17, num_sd_frames=3):
    f1, f2 = features_size // 2, features_size // 4
    out_dim = num_sd_frames * num_label_frames
    assert out_dim <= OUT_PAD, f"out_dim={out_dim} must be <= OUT_PAD={OUT_PAD}"
    ks = jax.random.split(key, 6)
    scale = 0.02

    w1 = (scale * jax.random.normal(ks[0], (features_size, f1), jnp.float32)
          ).astype(jnp.bfloat16)
    p1 = jnp.concatenate([
        scale * jax.random.normal(ks[1], (1, f1), jnp.float32),  # bias
        jnp.ones((1, f1), jnp.float32),                          # gamma
        jnp.zeros((1, f1), jnp.float32),                         # beta
    ], axis=0)

    w2 = (scale * jax.random.normal(ks[2], (f1, f2), jnp.float32)
          ).astype(jnp.bfloat16)
    p2 = jnp.concatenate([
        scale * jax.random.normal(ks[3], (1, f2), jnp.float32),
        jnp.ones((1, f2), jnp.float32),
        jnp.zeros((1, f2), jnp.float32),
    ], axis=0)

    w3 = scale * jax.random.normal(ks[4], (f2, out_dim), jnp.float32)
    b3 = scale * jax.random.normal(ks[5], (1, out_dim), jnp.float32)
    # Zero-pad the last layer to a lane-dense 128-wide output.
    w3p = jnp.pad(w3, ((0, 0), (0, OUT_PAD - out_dim))).astype(jnp.bfloat16)
    b3p = jnp.pad(b3, ((0, 0), (0, OUT_PAD - out_dim)))

    return (w1, p1, w2, p2, w3p, b3p), out_dim


def sdnet_reference(x, params, out_dim):
    """Pure-JAX reference with identical bf16-weight / f32-accumulation math."""
    w1, p1, w2, p2, w3p, b3p = params
    h = jnp.dot(x.astype(jnp.bfloat16), w1, preferred_element_type=jnp.float32)
    h = h + p1[0:1]
    h = _leaky_relu(_layernorm(h, p1[1:2], p1[2:3]))
    h = jnp.dot(h.astype(jnp.bfloat16), w2, preferred_element_type=jnp.float32)
    h = h + p2[0:1]
    h = _leaky_relu(_layernorm(h, p2[1:2], p2[2:3]))
    y = jnp.dot(h.astype(jnp.bfloat16), w3p, preferred_element_type=jnp.float32)
    y = y + b3p
    return y[:, :out_dim]


if __name__ == "__main__":
    key = jax.random.PRNGKey(0)
    k_x, k_x2, k_p = jax.random.split(key, 3)

    features_size = 512
    num_label_frames = 16 + 1
    num_sd_frames = 3
    params, out_dim = init_params(k_p, features_size, num_label_frames, num_sd_frames)

    # Small batch (single grid step).
    B = 8
    x = jax.random.normal(k_x, (B, features_size), jnp.float32)
    out = jax.block_until_ready(sdnet_forward(x, params, out_dim))
    ref = sdnet_reference(x, params, out_dim)
    assert out.shape == (B, out_dim)
    assert jnp.allclose(out, ref, atol=5e-3, rtol=5e-3)

    # Non-multiple batch: multi-step grid with a partial final block, no jnp.pad.
    B2 = 260
    x2 = jax.random.normal(k_x2, (B2, features_size), jnp.float32)
    out2 = jax.block_until_ready(sdnet_forward(x2, params, out_dim))
    ref2 = sdnet_reference(x2, params, out_dim)
    assert out2.shape == (B2, out_dim)
    assert jnp.allclose(out2, ref2, atol=5e-3, rtol=5e-3)

    # bf16 ingress path (halves the dominant x DMA stream; numerics unchanged
    # because the kernel casts x to bf16 before the MXU anyway).
    out3 = jax.block_until_ready(sdnet_forward(x2.astype(jnp.bfloat16), params, out_dim))
    assert out3.shape == (B2, out_dim)
    assert jnp.allclose(out3, ref2, atol=5e-3, rtol=5e-3)

    print("KERNEL_OK")
</pallas_src>

<mosaic_0001>
module attributes {stable_mosaic.version = 11 : i64} {
  func.func @sdnet_kernel(%arg0: i32, %arg1: memref<8x512xf32, #tpu.memory_space<vmem>>, %arg2: memref<512x256xbf16, #tpu.memory_space<vmem>>, %arg3: memref<3x256xf32, #tpu.memory_space<vmem>>, %arg4: memref<256x128xbf16, #tpu.memory_space<vmem>>, %arg5: memref<3x128xf32, #tpu.memory_space<vmem>>, %arg6: memref<128x128xbf16, #tpu.memory_space<vmem>>, %arg7: memref<1x128xf32, #tpu.memory_space<vmem>>, %arg8: memref<8x128xf32, #tpu.memory_space<vmem>>) attributes {dimension_semantics = [#tpu.dimension_semantics<parallel>], iteration_bounds = array<i64: 1>, scalar_prefetch = 0 : i64, scratch_operands = 0 : i64, tpu.core_type = #tpu.core_type<tc>, window_params = [{transform_indices = @transform_0, window_bounds = array<i64: 8, 512>}, {pipeline_mode = #tpu.pipeline_mode<synchronous>, transform_indices = @transform_1, window_bounds = array<i64: 512, 256>}, {pipeline_mode = #tpu.pipeline_mode<synchronous>, transform_indices = @transform_2, window_bounds = array<i64: 3, 256>}, {pipeline_mode = #tpu.pipeline_mode<synchronous>, transform_indices = @transform_3, window_bounds = array<i64: 256, 128>}, {pipeline_mode = #tpu.pipeline_mode<synchronous>, transform_indices = @transform_4, window_bounds = array<i64: 3, 128>}, {pipeline_mode = #tpu.pipeline_mode<synchronous>, transform_indices = @transform_5, window_bounds = array<i64: 128, 128>}, {pipeline_mode = #tpu.pipeline_mode<synchronous>, transform_indices = @transform_6, window_bounds = array<i64: 1, 128>}, {transform_indices = @transform_7, window_bounds = array<i64: 8, 128>}]} {
    %c0 = arith.constant 0 : index
    %c0_0 = arith.constant 0 : index
    %0 = vector.load %arg1[%c0, %c0_0] : memref<8x512xf32, #tpu.memory_space<vmem>>, vector<8x512xf32>
    %1 = arith.truncf %0 : vector<8x512xf32> to vector<8x512xbf16>
    %c0_1 = arith.constant 0 : index
    %c0_2 = arith.constant 0 : index
    %2 = vector.load %arg2[%c0_1, %c0_2] : memref<512x256xbf16, #tpu.memory_space<vmem>>, vector<512x256xbf16>
    %cst = arith.constant dense<0.000000e+00> : vector<8x256xf32>
    %3 = tpu.matmul %1, %2, %cst {dimension_numbers = #tpu.dot_dimension_numbers<[1], [0], [0], [1], [0, 0, 1, 1], [], []>} : vector<8x512xbf16>, vector<512x256xbf16>, vector<8x256xf32> -> vector<8x256xf32>
    %c0_3 = arith.constant 0 : index
    %c0_4 = arith.constant 0 : index
    %4 = vector.load %arg3[%c0_3, %c0_4] : memref<3x256xf32, #tpu.memory_space<vmem>>, vector<1x256xf32>
    %5 = vector.broadcast %4 : vector<1x256xf32> to vector<8x256xf32>
    %6 = arith.addf %3, %5 : vector<8x256xf32>
    %c1 = arith.constant 1 : index
    %c0_5 = arith.constant 0 : index
    %7 = vector.load %arg3[%c1, %c0_5] : memref<3x256xf32, #tpu.memory_space<vmem>>, vector<1x256xf32>
    %c2 = arith.constant 2 : index
    %c0_6 = arith.constant 0 : index
    %8 = vector.load %arg3[%c2, %c0_6] : memref<3x256xf32, #tpu.memory_space<vmem>>, vector<1x256xf32>
    %cst_7 = arith.constant dense<0.000000e+00> : vector<8xf32>
    %9 = vector.multi_reduction <add>, %6, %cst_7 [1] : vector<8x256xf32> to vector<8xf32>
    %10 = vector.shape_cast %9 : vector<8xf32> to vector<8x1xf32>
    %cst_8 = arith.constant 2.560000e+02 : f32
    %11 = vector.broadcast %cst_8 : f32 to vector<8x1xf32>
    %12 = arith.divf %10, %11 : vector<8x1xf32>
    %13 = arith.mulf %6, %6 : vector<8x256xf32>
    %cst_9 = arith.constant dense<0.000000e+00> : vector<8xf32>
    %14 = vector.multi_reduction <add>, %13, %cst_9 [1] : vector<8x256xf32> to vector<8xf32>
    %15 = vector.shape_cast %14 : vector<8xf32> to vector<8x1xf32>
    %cst_10 = arith.constant 2.560000e+02 : f32
    %16 = vector.broadcast %cst_10 : f32 to vector<8x1xf32>
    %17 = arith.divf %15, %16 : vector<8x1xf32>
    %18 = arith.mulf %12, %12 : vector<8x1xf32>
    %19 = arith.subf %17, %18 : vector<8x1xf32>
    %cst_11 = arith.constant 0.000000e+00 : f32
    %20 = vector.broadcast %cst_11 : f32 to vector<8x1xf32>
    %21 = arith.maximumf %19, %20 : vector<8x1xf32>
    %22 = vector.broadcast %12 : vector<8x1xf32> to vector<8x256xf32>
    %23 = arith.subf %6, %22 : vector<8x256xf32>
    %cst_12 = arith.constant 9.99999974E-6 : f32
    %24 = vector.broadcast %cst_12 : f32 to vector<8x1xf32>
    %25 = arith.addf %21, %24 : vector<8x1xf32>
    %26 = math.rsqrt %25 : vector<8x1xf32>
    %27 = vector.broadcast %26 : vector<8x1xf32> to vector<8x256xf32>
    %28 = arith.mulf %23, %27 : vector<8x256xf32>
    %29 = vector.broadcast %7 : vector<1x256xf32> to vector<8x256xf32>
    %30 = arith.mulf %28, %29 : vector<8x256xf32>
    %31 = vector.broadcast %8 : vector<1x256xf32> to vector<8x256xf32>
    %32 = arith.addf %30, %31 : vector<8x256xf32>
    %cst_13 = arith.constant 0.000000e+00 : f32
    %33 = vector.broadcast %cst_13 : f32 to vector<8x256xf32>
    %34 = arith.cmpf oge, %32, %33 : vector<8x256xf32>
    %cst_14 = arith.constant 5.000000e-02 : f32
    %35 = vector.broadcast %cst_14 : f32 to vector<8x256xf32>
    %36 = arith.mulf %35, %32 : vector<8x256xf32>
    %37 = arith.select %34, %32, %36 : vector<8x256xi1>, vector<8x256xf32>
    %38 = arith.truncf %37 : vector<8x256xf32> to vector<8x256xbf16>
    %c0_15 = arith.constant 0 : index
    %c0_16 = arith.constant 0 : index
    %39 = vector.load %arg4[%c0_15, %c0_16] : memref<256x128xbf16, #tpu.memory_space<vmem>>, vector<256x128xbf16>
    %cst_17 = arith.constant dense<0.000000e+00> : vector<8x128xf32>
    %40 = tpu.matmul %38, %39, %cst_17 {dimension_numbers = #tpu.dot_dimension_numbers<[1], [0], [0], [1], [0, 0, 1, 1], [], []>} : vector<8x256xbf16>, vector<256x128xbf16>, vector<8x128xf32> -> vector<8x128xf32>
    %c0_18 = arith.constant 0 : index
    %c0_19 = arith.constant 0 : index
    %41 = vector.load %arg5[%c0_18, %c0_19] : memref<3x128xf32, #tpu.memory_space<vmem>>, vector<1x128xf32>
    %42 = vector.broadcast %41 : vector<1x128xf32> to vector<8x128xf32>
    %43 = arith.addf %40, %42 : vector<8x128xf32>
    %c1_20 = arith.constant 1 : index
    %c0_21 = arith.constant 0 : index
    %44 = vector.load %arg5[%c1_20, %c0_21] : memref<3x128xf32, #tpu.memory_space<vmem>>, vector<1x128xf32>
    %c2_22 = arith.constant 2 : index
    %c0_23 = arith.constant 0 : index
    %45 = vector.load %arg5[%c2_22, %c0_23] : memref<3x128xf32, #tpu.memory_space<vmem>>, vector<1x128xf32>
    %cst_24 = arith.constant dense<0.000000e+00> : vector<8xf32>
    %46 = vector.multi_reduction <add>, %43, %cst_24 [1] : vector<8x128xf32> to vector<8xf32>
    %47 = vector.shape_cast %46 : vector<8xf32> to vector<8x1xf32>
    %cst_25 = arith.constant 1.280000e+02 : f32
    %48 = vector.broadcast %cst_25 : f32 to vector<8x1xf32>
    %49 = arith.divf %47, %48 : vector<8x1xf32>
    %50 = arith.mulf %43, %43 : vector<8x128xf32>
    %cst_26 = arith.constant dense<0.000000e+00> : vector<8xf32>
    %51 = vector.multi_reduction <add>, %50, %cst_26 [1] : vector<8x128xf32> to vector<8xf32>
    %52 = vector.shape_cast %51 : vector<8xf32> to vector<8x1xf32>
    %cst_27 = arith.constant 1.280000e+02 : f32
    %53 = vector.broadcast %cst_27 : f32 to vector<8x1xf32>
    %54 = arith.divf %52, %53 : vector<8x1xf32>
    %55 = arith.mulf %49, %49 : vector<8x1xf32>
    %56 = arith.subf %54, %55 : vector<8x1xf32>
    %cst_28 = arith.constant 0.000000e+00 : f32
    %57 = vector.broadcast %cst_28 : f32 to vector<8x1xf32>
    %58 = arith.maximumf %56, %57 : vector<8x1xf32>
    %59 = vector.broadcast %49 : vector<8x1xf32> to vector<8x128xf32>
    %60 = arith.subf %43, %59 : vector<8x128xf32>
    %cst_29 = arith.constant 9.99999974E-6 : f32
    %61 = vector.broadcast %cst_29 : f32 to vector<8x1xf32>
    %62 = arith.addf %58, %61 : vector<8x1xf32>
    %63 = math.rsqrt %62 : vector<8x1xf32>
    %64 = vector.broadcast %63 : vector<8x1xf32> to vector<8x128xf32>
    %65 = arith.mulf %60, %64 : vector<8x128xf32>
    %66 = vector.broadcast %44 : vector<1x128xf32> to vector<8x128xf32>
    %67 = arith.mulf %65, %66 : vector<8x128xf32>
    %68 = vector.broadcast %45 : vector<1x128xf32> to vector<8x128xf32>
    %69 = arith.addf %67, %68 : vector<8x128xf32>
    %cst_30 = arith.constant 0.000000e+00 : f32
    %70 = vector.broadcast %cst_30 : f32 to vector<8x128xf32>
    %71 = arith.cmpf oge, %69, %70 : vector<8x128xf32>
    %cst_31 = arith.constant 5.000000e-02 : f32
    %72 = vector.broadcast %cst_31 : f32 to vector<8x128xf32>
    %73 = arith.mulf %72, %69 : vector<8x128xf32>
    %74 = arith.select %71, %69, %73 : vector<8x128xi1>, vector<8x128xf32>
    %75 = arith.truncf %74 : vector<8x128xf32> to vector<8x128xbf16>
    %c0_32 = arith.constant 0 : index
    %c0_33 = arith.constant 0 : index
    %76 = vector.load %arg6[%c0_32, %c0_33] : memref<128x128xbf16, #tpu.memory_space<vmem>>, vector<128x128xbf16>
    %cst_34 = arith.constant dense<0.000000e+00> : vector<8x128xf32>
    %77 = tpu.matmul %75, %76, %cst_34 {dimension_numbers = #tpu.dot_dimension_numbers<[1], [0], [0], [1], [0, 0, 1, 1], [], []>} : vector<8x128xbf16>, vector<128x128xbf16>, vector<8x128xf32> -> vector<8x128xf32>
    %c0_35 = arith.constant 0 : index
    %c0_36 = arith.constant 0 : index
    %78 = vector.load %arg7[%c0_35, %c0_36] : memref<1x128xf32, #tpu.memory_space<vmem>>, vector<1x128xf32>
    %79 = vector.broadcast %78 : vector<1x128xf32> to vector<8x128xf32>
    %80 = arith.addf %77, %79 : vector<8x128xf32>
    %c0_37 = arith.constant 0 : index
    %c0_38 = arith.constant 0 : index
    %81 = vector.load %arg8[%c0_37, %c0_38] : memref<8x128xf32, #tpu.memory_space<vmem>>, vector<8x128xf32>
    tpu.vector_store %arg8[%c0_37, %c0_38], %80 {strides = array<i32>} : memref<8x128xf32, #tpu.memory_space<vmem>>, vector<8x128xf32>,
    return
  }
  func.func @transform_0(%arg0: i32) -> (i32, i32) {
    %c0_i32 = arith.constant 0 : i32
    %c0_i32_0 = arith.constant 0 : i32
    return %arg0, %c0_i32 : i32, i32
  }
  func.func @transform_1(%arg0: i32) -> (i32, i32) {
    %c0_i32 = arith.constant 0 : i32
    %c0_i32_0 = arith.constant 0 : i32
    %c0_i32_1 = arith.constant 0 : i32
    return %c0_i32, %c0_i32_0 : i32, i32
  }
  func.func @transform_2(%arg0: i32) -> (i32, i32) {
    %c0_i32 = arith.constant 0 : i32
    %c0_i32_0 = arith.constant 0 : i32
    %c0_i32_1 = arith.constant 0 : i32
    return %c0_i32, %c0_i32_0 : i32, i32
  }
  func.func @transform_3(%arg0: i32) -> (i32, i32) {
    %c0_i32 = arith.constant 0 : i32
    %c0_i32_0 = arith.constant 0 : i32
    %c0_i32_1 = arith.constant 0 : i32
    return %c0_i32, %c0_i32_0 : i32, i32
  }
  func.func @transform_4(%arg0: i32) -> (i32, i32) {
    %c0_i32 = arith.constant 0 : i32
    %c0_i32_0 = arith.constant 0 : i32
    %c0_i32_1 = arith.constant 0 : i32
    return %c0_i32, %c0_i32_0 : i32, i32
  }
  func.func @transform_5(%arg0: i32) -> (i32, i32) {
    %c0_i32 = arith.constant 0 : i32
    %c0_i32_0 = arith.constant 0 : i32
    %c0_i32_1 = arith.constant 0 : i32
    return %c0_i32, %c0_i32_0 : i32, i32
  }
  func.func @transform_6(%arg0: i32) -> (i32, i32) {
    %c0_i32 = arith.constant 0 : i32
    %c0_i32_0 = arith.constant 0 : i32
    %c0_i32_1 = arith.constant 0 : i32
    return %c0_i32, %c0_i32_0 : i32, i32
  }
  func.func @transform_7(%arg0: i32) -> (i32, i32) {
    %c0_i32 = arith.constant 0 : i32
    %c0_i32_0 = arith.constant 0 : i32
    return %arg0, %c0_i32 : i32, i32
  }
}

</mosaic_0001>

<bundles_post_ra>
// kernel: sdnet_forward.1
= control target key start
LH: loop header
LB: loop body
LE: loop exit
PB: predicated region body
PF: predicated region fallthrough
CT: control target
= control target key end

     0   :  { %12 = vsyncpa [#allocation3], 0  ;;  %s1724_s0 = inlined_call_operand.hbm [shape: f32[8,512], index: 0, kind: input, shape index: {}]   ;;  %s1725_s1 = inlined_call_operand.hbm [shape: bf16[512,256], index: 1, kind: input, shape index: {}]   ;;  %s1726_s2 = inlined_call_operand.hbm [shape: f32[3,256], index: 2, kind: input, shape index: {}]   ;;  %s1727_s3 = inlined_call_operand.hbm [shape: bf16[256,128], index: 3, kind: input, shape index: {}]   ;;  %s1728_s4 = inlined_call_operand.hbm [shape: f32[3,128], index: 4, kind: input, shape index: {}]   ;;  %s1729_s5 = inlined_call_operand.hbm [shape: bf16[128,128], index: 5, kind: input, shape index: {}]   ;;  %s1730_s6 = inlined_call_operand.vmem [shape: f32[1,128], index: 6, kind: input, shape index: {}]   ;;  %s1731_s7 = inlined_call_operand.hbm [shape: f32[8,128], index: 7, kind: output, shape index: {}]  }
   0x1   :  { %13 = vsyncpa [#allocation6], 0 }
   0x2   :  { %14 = vsyncpa [#allocation9], 0 }
   0x3   :  { %15 = vsyncpa [#allocation12], 0  ;;  %s32_s26 = sshll.u32 %s1725_s1, 4  ;;  %s33_s26 = int_to_ptr.hbm [resolvable:$true] %s32_s26 }
   0x4   :  { %16 = vsyncpa [#allocation4], 0  ;;  %s1619_s27 = smov [#allocation5]   ;;  %s56_s8 = sshll.u32 %s1727_s3, 4  ;;  %s57_s8 = int_to_ptr.hbm [resolvable:$true] %s56_s8 }
   0x5   :  { %s34_s28 = sshll.u32 %s1619_s27, 4  ;;  %s1620_s9 = smov 128   ;;  %s35_s28 = int_to_ptr.vmem [resolvable:$true] %s34_s28 }
   0x6   :  { %s1621_s10 = smov 8   ;;  %s1622_s11 = smov [#allocation8]  }
   0x7   :  { %40 = dma.hbm_to_vmem [thread:$0]  %s33_s26, 8192, %s35_s28, [#allocation6], %s1620_s9, %s1620_s9, %s1621_s10  }
   0x8   :  { %s58_s12 = sshll.u32 %s1622_s11, 4  ;;  %s1623_s13 = smov 64   ;;  %s59_s12 = int_to_ptr.vmem [resolvable:$true] %s58_s12 }
   0x9   :  { %s1624_s14 = smov 4   ;;  %s22_s16 = sshll.u32 %s1724_s0, 4  ;;  %s23_s16 = int_to_ptr.hbm [resolvable:$true] %s22_s16 }
   0xa   :  { %64 = dma.hbm_to_vmem [thread:$0]  %s57_s8, 2048, %s59_s12, [#allocation9], %s1623_s13, %s1623_s13, %s1624_s14  }
   0xb   :  { %s1625_s17 = smov [#allocation2]   ;;  %s46_s20 = sshll.u32 %s1726_s2, 4  ;;  %s47_s20 = int_to_ptr.hbm [resolvable:$true] %s46_s20 }
   0xc   :  { %s24_s18 = sshll.u32 %s1625_s17, 4  ;;  %s1626_s21 = smov [#allocation7]   ;;  %s25_s18 = int_to_ptr.vmem [resolvable:$true] %s24_s18 }
   0xd   :  { %27 = dma.hbm_to_vmem [thread:$0]  %s23_s16, 512, %s25_s18, [#allocation3]  }
   0xe   :  { %s48_s22 = sshll.u32 %s1626_s21, 4  ;;  %s70_s25 = sshll.u32 %s1728_s4, 4  ;;  %s49_s22 = int_to_ptr.vmem [resolvable:$true] %s48_s22  ;;  %s71_s25 = int_to_ptr.hbm [resolvable:$true] %s70_s25 }
   0xf   :  { %51 = dma.hbm_to_vmem [thread:$0]  %s47_s20, 128, %s49_s22, [#allocation6]  }
  0x10   :  { %s80_s27 = sshll.u32 %s1729_s5, 4  ;;  %s1627_s28 = smov [#allocation10]   ;;  %s81_s27 = int_to_ptr.hbm [resolvable:$true] %s80_s27 }
  0x11   :  { %s72_s29 = sshll.u32 %s1627_s28, 4  ;;  %s1628_s2 = smov [#allocation11]   ;;  %s73_s29 = int_to_ptr.vmem [resolvable:$true] %s72_s29 }
  0x12   :  { %75 = dma.hbm_to_vmem [thread:$0]  %s71_s25, 64, %s73_s29, [#allocation9]  }
  0x13   :  { %s82_s30 = sshll.u32 %s1628_s2, 4  ;;  %s83_s30 = int_to_ptr.vmem [resolvable:$true] %s82_s30 }
  0x14   :  { %88 = dma.hbm_to_vmem [thread:$0]  %s81_s27, 1024, %s83_s30, [#allocation12], %s1623_s13, %s1623_s13, %s1624_s14  }
  0x15   :  { %1609 = dma.done.wait [#allocation3], 512  }
  0x16   :  { %1610 = vsyncadd [#allocation3], 4294966784 }
  0x17   :  { %1611 = dma.done.wait [#allocation6], 8320  }
  0x18   :  { %1612 = vsyncadd [#allocation6], 4294958976 }
  0x19   :  { %1613 = dma.done.wait [#allocation9], 2112  }
  0x1a   :  { %1614 = vsyncadd [#allocation9], 4294965184 }
  0x1b   :  { %1615 = dma.done.wait [#allocation12], 1024  }
  0x1c   :  { %1616 = vsyncadd [#allocation12], 4294966272  ;;  %v1034_v0 = vld [vmem:[#allocation5 + $0x70] sm:$0xf]  ;;  %v1343_v1 = vld [vmem:[#allocation5 + $0x74] sm:$0xf0] }
  0x1d   :  { %v1098_v2 = vld [vmem:[#allocation5 + $0xf0] sm:$0xf]  ;;  %v1035_v3 = vor.u32 %v1343_v1, %v1034_v0  ;;  %v1359_v4 = vld [vmem:[#allocation5 + $0xf4] sm:$0xf0]  ;;  %v1026_v11 = vld [vmem:[#allocation5 + $0x60] sm:$0xf] }
  0x1e   :  { %v1162_v5 = vld [vmem:[#allocation5 + $0x170] sm:$0xf]  ;;  %v1375_v6 = vld [vmem:[#allocation5 + $0x174] sm:$0xf0]  ;;  %v1099_v7 = vor.u32 %v1359_v4, %v1098_v2  ;;  %v1341_v13 = vld [vmem:[#allocation5 + $0x64] sm:$0xf0] }
  0x1f   :  { %v1163_v8 = vor.u32 %v1375_v6, %v1162_v5  ;;  %v1226_v9 = vld [vmem:[#allocation5 + $0x1f0] sm:$0xf]  ;;  %v1391_v10 = vld [vmem:[#allocation5 + $0x1f4] sm:$0xf0]  ;;  %513 = vmatpush.bf16.msra.mxu0 %v1035_v3  ;;  %v1090_v14 = vld [vmem:[#allocation5 + $0xe0] sm:$0xf]  ;;  %v1027_v16 = vor.u32 %v1341_v13, %v1026_v11 }
  0x20   :  { %v1227_v12 = vor.u32 %v1391_v10, %v1226_v9  ;;  %v1357_v15 = vld [vmem:[#allocation5 + $0xe4] sm:$0xf0]  ;;  %526 = vmatpush.bf16.msra.mxu1 %v1099_v7  ;;  %v1154_v18 = vld [vmem:[#allocation5 + $0x160] sm:$0xf]  ;;  %v1018_v23 = vld [vmem:[#allocation5 + $0x50] sm:$0xf] }
  0x21   :  { %539 = vmatpush.bf16.msra.mxu2 %v1163_v8  ;;  %v1091_v17 = vor.u32 %v1357_v15, %v1090_v14  ;;  %v1373_v19 = vld [vmem:[#allocation5 + $0x164] sm:$0xf0]  ;;  %v1218_v20 = vld [vmem:[#allocation5 + $0x1e0] sm:$0xf]  ;;  %v1339_v24 = vld [vmem:[#allocation5 + $0x54] sm:$0xf0] }
  0x22   :  { %552 = vmatpush.bf16.msra.mxu3 %v1227_v12  ;;  %v1155_v21 = vor.u32 %v1373_v19, %v1154_v18  ;;  %v1389_v22 = vld [vmem:[#allocation5 + $0x1e4] sm:$0xf0]  ;;  %v1082_v26 = vld [vmem:[#allocation5 + $0xd0] sm:$0xf]  ;;  %v1355_v27 = vld [vmem:[#allocation5 + $0xd4] sm:$0xf0]  ;;  %v1019_v29 = vor.u32 %v1339_v24, %v1018_v23 }
  0x23   :  { %v1219_v25 = vor.u32 %v1389_v22, %v1218_v20  ;;  %v1146_v28 = vld [vmem:[#allocation5 + $0x150] sm:$0xf]  ;;  %514 = vmatpush.bf16.msra.mxu0 %v1027_v16  ;;  %v1371_v30 = vld [vmem:[#allocation5 + $0x154] sm:$0xf0]  ;;  %v1083_v33 = vor.u32 %v1355_v27, %v1082_v26  ;;  %v1010_v35 = vld [vmem:[#allocation5 + $0x40] sm:$0xf] }
  0x24   :  { %v1210_v31 = vld [vmem:[#allocation5 + $0x1d0] sm:$0xf]  ;;  %v1387_v32 = vld [vmem:[#allocation5 + $0x1d4] sm:$0xf0]  ;;  %527 = vmatpush.bf16.msra.mxu1 %v1091_v17  ;;  %v1147_v34 = vor.u32 %v1371_v30, %v1146_v28  ;;  %v1337_v36 = vld [vmem:[#allocation5 + $0x44] sm:$0xf0] }
  0x25   :  { %540 = vmatpush.bf16.msra.mxu2 %v1155_v21  ;;  %v1074_v37 = vld [vmem:[#allocation5 + $0xc0] sm:$0xf]  ;;  %v1211_v38 = vor.u32 %v1387_v32, %v1210_v31  ;;  %v1353_v39 = vld [vmem:[#allocation5 + $0xc4] sm:$0xf0]  ;;  %v1011_v44 = vor.u32 %v1337_v36, %v1010_v35  ;;  %v1002_v47 = vld [vmem:[#allocation5 + $0x30] sm:$0xf] }
  0x26   :  { %553 = vmatpush.bf16.msra.mxu3 %v1219_v25  ;;  %v1138_v40 = vld [vmem:[#allocation5 + $0x140] sm:$0xf]  ;;  %v1369_v41 = vld [vmem:[#allocation5 + $0x144] sm:$0xf0]  ;;  %v1075_v45 = vor.u32 %v1353_v39, %v1074_v37  ;;  %v1335_v48 = vld [vmem:[#allocation5 + $0x34] sm:$0xf0] }
  0x27   :  { %v1202_v42 = vld [vmem:[#allocation5 + $0x1c0] sm:$0xf]  ;;  %v1385_v43 = vld [vmem:[#allocation5 + $0x1c4] sm:$0xf0]  ;;  %515 = vmatpush.bf16.msra.mxu0 %v1019_v29  ;;  %v1139_v46 = vor.u32 %v1369_v41, %v1138_v40  ;;  %v1066_v49 = vld [vmem:[#allocation5 + $0xb0] sm:$0xf]  ;;  %v1003_v56 = vor.u32 %v1335_v48, %v1002_v47 }
  0x28   :  { %528 = vmatpush.bf16.msra.mxu1 %v1083_v33  ;;  %v1203_v50 = vor.u32 %v1385_v43, %v1202_v42  ;;  %v1351_v51 = vld [vmem:[#allocation5 + $0xb4] sm:$0xf0]  ;;  %v1130_v52 = vld [vmem:[#allocation5 + $0x130] sm:$0xf]  ;;  %v994_v59 = vld [vmem:[#allocation5 + $0x20] sm:$0xf] }
  0x29   :  { %541 = vmatpush.bf16.msra.mxu2 %v1147_v34  ;;  %v1367_v53 = vld [vmem:[#allocation5 + $0x134] sm:$0xf0]  ;;  %v1194_v54 = vld [vmem:[#allocation5 + $0x1b0] sm:$0xf]  ;;  %v1067_v57 = vor.u32 %v1351_v51, %v1066_v49  ;;  %v1333_v60 = vld [vmem:[#allocation5 + $0x24] sm:$0xf0] }
  0x2a   :  { %554 = vmatpush.bf16.msra.mxu3 %v1211_v38  ;;  %v1383_v55 = vld [vmem:[#allocation5 + $0x1b4] sm:$0xf0]  ;;  %v1131_v58 = vor.u32 %v1367_v53, %v1130_v52  ;;  %v1058_v61 = vld [vmem:[#allocation5 + $0xa0] sm:$0xf]  ;;  %v1349_v63 = vld [vmem:[#allocation5 + $0xa4] sm:$0xf0]  ;;  %v995_v4 = vor.u32 %v1333_v60, %v994_v59 }
  0x2b   :  { %516 = vmatpush.bf16.msra.mxu0 %v1011_v44  ;;  %v1195_v62 = vor.u32 %v1383_v55, %v1194_v54  ;;  %v1122_v0 = vld [vmem:[#allocation5 + $0x120] sm:$0xf]  ;;  %v1365_v1 = vld [vmem:[#allocation5 + $0x124] sm:$0xf0]  ;;  %v1059_v5 = vor.u32 %v1349_v63, %v1058_v61  ;;  %v986_v7 = vld [vmem:[#allocation5 + $0x10] sm:$0xf] }
  0x2c   :  { %529 = vmatpush.bf16.msra.mxu1 %v1075_v45  ;;  %v1186_v2 = vld [vmem:[#allocation5 + $0x1a0] sm:$0xf]  ;;  %v1381_v3 = vld [vmem:[#allocation5 + $0x1a4] sm:$0xf0]  ;;  %v1123_v6 = vor.u32 %v1365_v1, %v1122_v0  ;;  %v1331_v8 = vld [vmem:[#allocation5 + $0x14] sm:$0xf0] }
  0x2d   :  { %542 = vmatpush.bf16.msra.mxu2 %v1139_v46  ;;  %v1050_v9 = vld [vmem:[#allocation5 + $0x90] sm:$0xf]  ;;  %v1187_v10 = vor.u32 %v1381_v3, %v1186_v2  ;;  %v1347_v11 = vld [vmem:[#allocation5 + $0x94] sm:$0xf0]  ;;  %v987_v16 = vor.u32 %v1331_v8, %v986_v7  ;;  %v978_v17 = vld [vmem:[#allocation5] sm:$0xf] }
  0x2e   :  { %555 = vmatpush.bf16.msra.mxu3 %v1203_v50  ;;  %v1114_v12 = vld [vmem:[#allocation5 + $0x110] sm:$0xf]  ;;  %v1363_v13 = vld [vmem:[#allocation5 + $0x114] sm:$0xf0]  ;;  %v1329_v18 = vld [vmem:[#allocation5 + $0x4] sm:$0xf0]  ;;  %v1051_v19 = vor.u32 %v1347_v11, %v1050_v9 }
  0x2f   :  { %517 = vmatpush.bf16.msra.mxu0 %v1003_v56  ;;  %v1178_v14 = vld [vmem:[#allocation5 + $0x190] sm:$0xf]  ;;  %v1379_v15 = vld [vmem:[#allocation5 + $0x194] sm:$0xf0]  ;;  %v1115_v20 = vor.u32 %v1363_v13, %v1114_v12  ;;  %v1042_v21 = vld [vmem:[#allocation5 + $0x80] sm:$0xf]  ;;  %v979_v31 = vor.u32 %v1329_v18, %v978_v17 }
  0x30   :  { %530 = vmatpush.bf16.msra.mxu1 %v1067_v57  ;;  %v1345_v22 = vld [vmem:[#allocation5 + $0x84] sm:$0xf0]  ;;  %v1106_v23 = vld [vmem:[#allocation5 + $0x100] sm:$0xf]  ;;  %v1179_v24 = vor.u32 %v1379_v15, %v1178_v14  ;;  %v1342_v28 = vld [vmem:[#allocation5 + $0x74] sm:$0xf] }
  0x31   :  { %543 = vmatpush.bf16.msra.mxu2 %v1131_v58  ;;  %v1361_v25 = vld [vmem:[#allocation5 + $0x104] sm:$0xf0]  ;;  %v1170_v26 = vld [vmem:[#allocation5 + $0x180] sm:$0xf]  ;;  %v1036_v29 = vld [vmem:[#allocation5 + $0x78] sm:$0xf0]  ;;  %v1043_v35 = vor.u32 %v1345_v22, %v1042_v21 }
  0x32   :  { %556 = vmatpush.bf16.msra.mxu3 %v1195_v62  ;;  %v1377_v27 = vld [vmem:[#allocation5 + $0x184] sm:$0xf0]  ;;  %v1358_v30 = vld [vmem:[#allocation5 + $0xf4] sm:$0xf]  ;;  %v1100_v32 = vld [vmem:[#allocation5 + $0xf8] sm:$0xf0]  ;;  %v1107_v36 = vor.u32 %v1361_v25, %v1106_v23  ;;  %v1039_v41 = vor.u32 %v1342_v28, %v1036_v29 }
  0x33   :  { %518 = vmatpush.bf16.msra.mxu0 %v995_v4  ;;  %v1374_v33 = vld [vmem:[#allocation5 + $0x174] sm:$0xf]  ;;  %v1164_v34 = vld [vmem:[#allocation5 + $0x178] sm:$0xf0]  ;;  %v1171_v40 = vor.u32 %v1377_v27, %v1170_v26  ;;  %v1340_v42 = vld [vmem:[#allocation5 + $0x64] sm:$0xf]  ;;  %v1103_v45 = vor.u32 %v1358_v30, %v1100_v32 }
  0x34   :  { %531 = vmatpush.bf16.msra.mxu1 %v1059_v5  ;;  %v1390_v37 = vld [vmem:[#allocation5 + $0x1f4] sm:$0xf]  ;;  %v1228_v38 = vld [vmem:[#allocation5 + $0x1f8] sm:$0xf0]  ;;  %v1028_v43 = vld [vmem:[#allocation5 + $0x68] sm:$0xf0]  ;;  %v1167_v46 = vor.u32 %v1374_v33, %v1164_v34 }
  0x35   :  { %544 = vmatpush.bf16.msra.mxu2 %v1123_v6  ;;  %v117_v39 = vld [vmem:[#allocation2 + $0x10] sm:$0xff]  ;;  %v115_v44 = vld [vmem:[#allocation2] sm:$0xff]  ;;  %v118_v48 = vld [vmem:[#allocation2 + $0x18] sm:$0xff]  ;;  %v1231_v50 = vor.u32 %v1390_v37, %v1228_v38  ;;  %v1031_v59 = vor.u32 %v1340_v42, %v1028_v43  ;;  %s1631_s8 = smov [#allocation13]   ;;  %s963_s12 = sshll.u32 %s1731_s7, 4  ;;  %s964_s12 = int_to_ptr.hbm [resolvable:$true] %s963_s12 }
  0x36   :  { %557 = vmatpush.bf16.msra.mxu3 %v1187_v10  ;;  %v1356_v47 = vld [vmem:[#allocation5 + $0xe4] sm:$0xf]  ;;  %v116_v49 = vld [vmem:[#allocation2 + $0x8] sm:$0xff]  ;;  %v1690_v54 = vpack.c.bf16 %v117_v39, %v117_v39  ;;  %v1692_v57 = vpack.c.bf16 %v115_v44, %v115_v44  ;;  %v1694_v58 = vpack.c.bf16 %v118_v48, %v118_v48  ;;  %v1338_v63 = vld [vmem:[#allocation5 + $0x54] sm:$0xf]  ;;  %s961_s9 = sshll.u32 %s1631_s8, 4  ;;  %s962_s9 = int_to_ptr.vmem [resolvable:$true] %s961_s9 }
  0x37   :  { %519 = vmatpush.bf16.msra.mxu0 %v987_v16  ;;  %v1092_v51 = vld [vmem:[#allocation5 + $0xe8] sm:$0xf0]  ;;  %v1372_v52 = vld [vmem:[#allocation5 + $0x164] sm:$0xf]  ;;  %v1696_v60 = vpack.c.bf16 %v116_v49, %v116_v49  ;;  %v1020_v0 = vld [vmem:[#allocation5 + $0x58] sm:$0xf0] }
  0x38   :  { %532 = vmatpush.bf16.msra.mxu1 %v1051_v19  ;;  %v1156_v53 = vld [vmem:[#allocation5 + $0x168] sm:$0xf0]  ;;  %v1388_v55 = vld [vmem:[#allocation5 + $0x1e4] sm:$0xf]  ;;  %v1095_v61 = vor.u32 %v1356_v47, %v1092_v51  ;;  %v1354_v1 = vld [vmem:[#allocation5 + $0xd4] sm:$0xf]  ;;  %v1023_v8 = vor.u32 %v1338_v63, %v1020_v0 }
  0x39   :  { %545 = vmatpush.bf16.msra.mxu2 %v1115_v20  ;;  %v1220_v56 = vld [vmem:[#allocation5 + $0x1e8] sm:$0xf0]  ;;  %v1159_v62 = vor.u32 %v1372_v52, %v1156_v53  ;;  %v1084_v3 = vld [vmem:[#allocation5 + $0xd8] sm:$0xf0]  ;;  %v1370_v4 = vld [vmem:[#allocation5 + $0x154] sm:$0xf] }
  0x3a   :  { %558 = vmatpush.bf16.msra.mxu3 %v1179_v24  ;;  %v1223_v2 = vor.u32 %v1388_v55, %v1220_v56  ;;  %v1148_v5 = vld [vmem:[#allocation5 + $0x158] sm:$0xf0]  ;;  %v1386_v6 = vld [vmem:[#allocation5 + $0x1d4] sm:$0xf]  ;;  %v1087_v9 = vor.u32 %v1354_v1, %v1084_v3  ;;  %v1336_v11 = vld [vmem:[#allocation5 + $0x44] sm:$0xf] }
  0x3b   :  { %520 = vmatpush.bf16.msra.mxu0 %v979_v31  ;;  %v1212_v7 = vld [vmem:[#allocation5 + $0x1d8] sm:$0xf0]  ;;  %v1151_v10 = vor.u32 %v1370_v4, %v1148_v5  ;;  %v1012_v12 = vld [vmem:[#allocation5 + $0x48] sm:$0xf0]  ;;  %v1352_v13 = vld [vmem:[#allocation5 + $0xc4] sm:$0xf] }
  0x3c   :  { %533 = vmatpush.bf16.msra.mxu1 %v1043_v35  ;;  %v1215_v14 = vor.u32 %v1386_v6, %v1212_v7  ;;  %v1076_v15 = vld [vmem:[#allocation5 + $0xc8] sm:$0xf0]  ;;  %v1368_v16 = vld [vmem:[#allocation5 + $0x144] sm:$0xf]  ;;  %v1015_v20 = vor.u32 %v1336_v11, %v1012_v12  ;;  %v1334_v23 = vld [vmem:[#allocation5 + $0x34] sm:$0xf] }
  0x3d   :  { %546 = vmatpush.bf16.msra.mxu2 %v1107_v36  ;;  %v1140_v17 = vld [vmem:[#allocation5 + $0x148] sm:$0xf0]  ;;  %v1384_v18 = vld [vmem:[#allocation5 + $0x1c4] sm:$0xf]  ;;  %v1079_v21 = vor.u32 %v1352_v13, %v1076_v15  ;;  %v1004_v24 = vld [vmem:[#allocation5 + $0x38] sm:$0xf0] }
  0x3e   :  { %559 = vmatpush.bf16.msra.mxu3 %v1171_v40  ;;  %521 = vmatmul.bf16.vlgmr.msra.gmra.mxu0 %v1692_v57  ;;  %v1204_v19 = vld [vmem:[#allocation5 + $0x1c8] sm:$0xf0]  ;;  %v1143_v22 = vor.u32 %v1368_v16, %v1140_v17  ;;  %v1350_v25 = vld [vmem:[#allocation5 + $0xb4] sm:$0xf]  ;;  %v1068_v27 = vld [vmem:[#allocation5 + $0xb8] sm:$0xf0]  ;;  %v1007_v32 = vor.u32 %v1334_v23, %v1004_v24 }
  0x3f   :  { %565 = vmatpush.bf16.msrb.mxu0 %v1039_v41  ;;  %534 = vmatmul.bf16.vlgmr.msra.gmra.mxu1 %v1696_v60  ;;  %v1207_v26 = vor.u32 %v1384_v18, %v1204_v19  ;;  %v1366_v28 = vld [vmem:[#allocation5 + $0x134] sm:$0xf]  ;;  %v1132_v29 = vld [vmem:[#allocation5 + $0x138] sm:$0xf0]  ;;  %v1332_v33 = vld [vmem:[#allocation5 + $0x24] sm:$0xf]  ;;  %v1071_v34 = vor.u32 %v1350_v25, %v1068_v27 }
  0x40   :  { %578 = vmatpush.bf16.msrb.mxu1 %v1103_v45  ;;  %547 = vmatmul.bf16.vlgmr.msra.gmra.mxu2 %v1690_v54  ;;  %v1382_v30 = vld [vmem:[#allocation5 + $0x1b4] sm:$0xf]  ;;  %v1196_v31 = vld [vmem:[#allocation5 + $0x1b8] sm:$0xf0]  ;;  %v1135_v35 = vor.u32 %v1366_v28, %v1132_v29  ;;  %v996_v36 = vld [vmem:[#allocation5 + $0x28] sm:$0xf0] }
  0x41   :  { %591 = vmatpush.bf16.msrb.mxu2 %v1167_v46  ;;  %560 = vmatmul.bf16.vlgmr.msra.gmra.mxu3 %v1694_v58  ;;  %v1348_v37 = vld [vmem:[#allocation5 + $0xa4] sm:$0xf]  ;;  %v1199_v38 = vor.u32 %v1382_v30, %v1196_v31  ;;  %v1060_v39 = vld [vmem:[#allocation5 + $0xa8] sm:$0xf0]  ;;  %v999_v44 = vor.u32 %v1332_v33, %v996_v36  ;;  %v1330_v47 = vld [vmem:[#allocation5 + $0x14] sm:$0xf] }
  0x42   :  { %604 = vmatpush.bf16.msrb.mxu3 %v1231_v50  ;;  %v1364_v40 = vld [vmem:[#allocation5 + $0x124] sm:$0xf]  ;;  %v1124_v41 = vld [vmem:[#allocation5 + $0x128] sm:$0xf0]  ;;  %v1063_v45 = vor.u32 %v1348_v37, %v1060_v39  ;;  %v988_v48 = vld [vmem:[#allocation5 + $0x18] sm:$0xf0] }
  0x43   :  { %566 = vmatpush.bf16.msrb.mxu0 %v1031_v59  ;;  %v1380_v42 = vld [vmem:[#allocation5 + $0x1a4] sm:$0xf]  ;;  %v1188_v43 = vld [vmem:[#allocation5 + $0x1a8] sm:$0xf0]  ;;  %v1127_v46 = vor.u32 %v1364_v40, %v1124_v41  ;;  %v1346_v49 = vld [vmem:[#allocation5 + $0x94] sm:$0xf]  ;;  %v991_v59 = vor.u32 %v1330_v47, %v988_v48 }
  0x44   :  { %579 = vmatpush.bf16.msrb.mxu1 %v1095_v61  ;;  %v1191_v50 = vor.u32 %v1380_v42, %v1188_v43  ;;  %v1052_v51 = vld [vmem:[#allocation5 + $0x98] sm:$0xf0]  ;;  %v1362_v52 = vld [vmem:[#allocation5 + $0x114] sm:$0xf]  ;;  %v1328_v63 = vld [vmem:[#allocation5 + $0x4] sm:$0xf] }
  0x45   :  { %592 = vmatpush.bf16.msrb.mxu2 %v1159_v62  ;;  %v1116_v53 = vld [vmem:[#allocation5 + $0x118] sm:$0xf0]  ;;  %v1378_v55 = vld [vmem:[#allocation5 + $0x194] sm:$0xf]  ;;  %v1055_v61 = vor.u32 %v1346_v49, %v1052_v51  ;;  %v980_v0 = vld [vmem:[#allocation5 + $0x8] sm:$0xf0] }
  0x46   :  { %605 = vmatpush.bf16.msrb.mxu3 %v1223_v2  ;;  %v1180_v56 = vld [vmem:[#allocation5 + $0x198] sm:$0xf0]  ;;  %v1119_v62 = vor.u32 %v1362_v52, %v1116_v53  ;;  %v1344_v1 = vld [vmem:[#allocation5 + $0x84] sm:$0xf]  ;;  %v1044_v3 = vld [vmem:[#allocation5 + $0x88] sm:$0xf0] }
  0x47   :  { %567 = vmatpush.bf16.msrb.mxu0 %v1023_v8  ;;  %v1183_v2 = vor.u32 %v1378_v55, %v1180_v56  ;;  %v1360_v4 = vld [vmem:[#allocation5 + $0x104] sm:$0xf]  ;;  %v1108_v5 = vld [vmem:[#allocation5 + $0x108] sm:$0xf0]  ;;  %v983_v8 = vor.u32 %v1328_v63, %v980_v0  ;;  %v1629_v39 = vmov 256.0   ;;  %v1397_v47 = vld [vmem:[#allocation8 + $0x28] sm:$0xff] }
  0x48   :  { %580 = vmatpush.bf16.msrb.mxu1 %v1087_v9  ;;  %v1376_v6 = vld [vmem:[#allocation5 + $0x184] sm:$0xf]  ;;  %v1172_v7 = vld [vmem:[#allocation5 + $0x188] sm:$0xf0]  ;;  %v1047_v9 = vor.u32 %v1344_v1, %v1044_v3  ;;  %1433 = vrcp.f32 %v1629_v39  ;;  %v1405_v48 = vld [vmem:[#allocation8 + $0x68] sm:$0xff] }
  0x49   :  { %593 = vmatpush.bf16.msrb.mxu2 %v1151_v10  ;;  %v1111_v10 = vor.u32 %v1360_v4, %v1108_v5  ;;  %v1175_v11 = vor.u32 %v1376_v6, %v1172_v7  ;;  %v1399_v40 = vld [vmem:[#allocation8 + $0x38] sm:$0xff]  ;;  %v1404_v51 = vld [vmem:[#allocation8 + $0x60] sm:$0xff]  ;;  %v1393_v63 = vld [vmem:[#allocation8 + $0x8] sm:$0xff] }
  0x4a   :  { %606 = vmatpush.bf16.msrb.mxu3 %v1215_v14  ;;  %v1407_v41 = vld [vmem:[#allocation8 + $0x78] sm:$0xff]  ;;  %v1401_v0 = vld [vmem:[#allocation8 + $0x48] sm:$0xff]  ;;  %v1392_v3 = vld [vmem:[#allocation8] sm:$0xff] }
  0x4b   :  { %568 = vmatpush.bf16.msrb.mxu0 %v1015_v20  ;;  %v187_v20 = vld [vmem:[#allocation7] ss:$4 sm:$0x3]  ;;  %v1400_v4 = vld [vmem:[#allocation8 + $0x40] sm:$0xff] }
  0x4c   :  { %581 = vmatpush.bf16.msrb.mxu1 %v1079_v21  ;;  %v189_v21 = vperm.slane %v187_v20, 0  ;;  %v1395_v53 = vld [vmem:[#allocation8 + $0x18] sm:$0xff] }
  0x4d   :  { %594 = vmatpush.bf16.msrb.mxu2 %v1143_v22  ;;  %v190_v22 = vperm.slane %v187_v20, 1  ;;  %v1403_v55 = vld [vmem:[#allocation8 + $0x58] sm:$0xff] }
  0x4e   :  { %607 = vmatpush.bf16.msrb.mxu3 %v1207_v26  ;;  %v1434_v42 = vpop.eup %1433 }
  0x4f   :  { %569 = vmatpush.bf16.msrb.mxu0 %v1007_v32  ;;  %v625_v43 = vmul.f32 256.0, %v1434_v42  ;;  %vm629_vm0 = vweird.f32 %v1434_v42 }
  0x50   :  { %582 = vmatpush.bf16.msrb.mxu1 %v1071_v34 }
  0x51   :  { %595 = vmatpush.bf16.msrb.mxu2 %v1135_v35 }
  0x52   :  { %608 = vmatpush.bf16.msrb.mxu3 %v1199_v38 }
  0x53   :  { %570 = vmatpush.bf16.msrb.mxu0 %v999_v44  ;;  %v1398_v44 = vld [vmem:[#allocation8 + $0x30] sm:$0xff] }
  0x54   :  { %583 = vmatpush.bf16.msrb.mxu1 %v1063_v45  ;;  %v1406_v45 = vld [vmem:[#allocation8 + $0x70] sm:$0xff] }
  0x55   :  { %596 = vmatpush.bf16.msrb.mxu2 %v1127_v46  ;;  %v626_v46 = vsub.f32 1.0, %v625_v43 }
  0x56   :  { %609 = vmatpush.bf16.msrb.mxu3 %v1191_v50  ;;  %v1396_v50 = vld [vmem:[#allocation8 + $0x20] sm:$0xff] }
  0x57   :  { %571 = vmatpush.bf16.msrb.mxu0 %v991_v59  ;;  %v627_v49 = vmul.f32 %v1434_v42, %v626_v46 }
  0x58   :  { %584 = vmatpush.bf16.msrb.mxu1 %v1055_v61  ;;  %v1394_v61 = vld [vmem:[#allocation8 + $0x10] sm:$0xff] }
  0x59   :  { %597 = vmatpush.bf16.msrb.mxu2 %v1119_v62  ;;  %v628_v52 = vadd.f32 %v1434_v42, %v627_v49  ;;  %v1402_v62 = vld [vmem:[#allocation8 + $0x50] sm:$0xff]  ;;  %v1412_v49 = vld [vmem:[#allocation11 + $0x20] sm:$0xff] }
  0x5a   :  { %610 = vmatpush.bf16.msrb.mxu3 %v1183_v2 }
  0x5b   :  { %572 = vmatpush.bf16.msrb.mxu0 %v983_v8  ;;  %v630_v59 = vsel %vm629_vm0, %v1434_v42, %v628_v52  ;;  %v1415_v42 = vld [vmem:[#allocation11 + $0x38] sm:$0xff] }
  0x5c   :  { %585 = vmatpush.bf16.msrb.mxu1 %v1047_v9 }
  0x5d   :  { %598 = vmatpush.bf16.msrb.mxu2 %v1111_v10 }
  0x5e   :  { %611 = vmatpush.bf16.msrb.mxu3 %v1175_v11  ;;  %573 = vmatmul.bf16.vlgmr.msrb.gmra.mxu0 %v1692_v57 }
  0x5f   :  { %586 = vmatmul.bf16.vlgmr.msrb.gmra.mxu1 %v1696_v60  ;;  %808 = vmatpush.bf16.msra.mxu0 %v1399_v40 }
  0x60   :  { %599 = vmatmul.bf16.vlgmr.msrb.gmra.mxu2 %v1690_v54  ;;  %821 = vmatpush.bf16.msra.mxu1 %v1407_v41  ;;  %v1630_v41 = vmov 128.0  }
  0x61   :  { %612 = vmatmul.bf16.vlgmr.msrb.gmra.mxu3 %v1694_v58  ;;  %942 = vmatpush.bf16.msra.mxu2 %v1415_v42 }
  0x63   :  { %809 = vmatpush.bf16.msra.mxu0 %v1398_v44 }
  0x64   :  { %822 = vmatpush.bf16.msra.mxu1 %v1406_v45  ;;  %v1414_v45 = vld [vmem:[#allocation11 + $0x30] sm:$0xff] }
  0x65   :  { %943 = vmatpush.bf16.msra.mxu2 %v1414_v45 }
  0x67   :  { %810 = vmatpush.bf16.msra.mxu0 %v1397_v47  ;;  %v1413_v47 = vld [vmem:[#allocation11 + $0x28] sm:$0xff] }
  0x68   :  { %823 = vmatpush.bf16.msra.mxu1 %v1405_v48 }
  0x69   :  { %944 = vmatpush.bf16.msra.mxu2 %v1413_v47 }
  0x6b   :  { %811 = vmatpush.bf16.msra.mxu0 %v1396_v50 }
  0x6c   :  { %824 = vmatpush.bf16.msra.mxu1 %v1404_v51  ;;  %v1411_v51 = vld [vmem:[#allocation11 + $0x18] sm:$0xff] }
  0x6d   :  { %945 = vmatpush.bf16.msra.mxu2 %v1412_v49 }
  0x6f   :  { %812 = vmatpush.bf16.msra.mxu0 %v1395_v53 }
  0x70   :  { %825 = vmatpush.bf16.msra.mxu1 %v1403_v55  ;;  %v1410_v55 = vld [vmem:[#allocation11 + $0x10] sm:$0xff] }
  0x71   :  { %946 = vmatpush.bf16.msra.mxu2 %v1411_v51 }
  0x73   :  { %813 = vmatpush.bf16.msra.mxu0 %v1394_v61 }
  0x74   :  { %826 = vmatpush.bf16.msra.mxu1 %v1402_v62  ;;  %v1408_v62 = vld [vmem:[#allocation11] sm:$0xff] }
  0x75   :  { %947 = vmatpush.bf16.msra.mxu2 %v1410_v55 }
  0x77   :  { %814 = vmatpush.bf16.msra.mxu0 %v1393_v63 }
  0x78   :  { %827 = vmatpush.bf16.msra.mxu1 %v1401_v0 }
  0x7b   :  { %815 = vmatpush.bf16.msra.mxu0 %v1392_v3 }
  0x7c   :  { %828 = vmatpush.bf16.msra.mxu1 %v1400_v4 }
  0xbb   :  { %v522_v12 = vpop.f32.mrf.mxu0 }
  0xbc   :  { %v535_v13 = vpop.f32.mrf.mxu1  ;;  %v523_v23 = vadd.f32 %v522_v12, %v189_v21 }
  0xbe   :  { %v536_v60 = vadd.f32 %v535_v13, %v523_v23 }
  0xc3   :  { %v548_v14 = vpop.f32.mrf.mxu2  ;;  %v524_v16 = vpop.f32.mrf.mxu0 }
  0xc4   :  { %v561_v15 = vpop.f32.mrf.mxu3  ;;  %v537_v17 = vpop.f32.mrf.mxu1  ;;  %v549_v54 = vadd.f32 %v548_v14, %v536_v60 }
  0xc5   :  { %v620_v17 = vld [vmem:[#allocation7 + $0x2] ss:$4 sm:$0x3] }
  0xc6   :  { %v1706_v31 = vadd.f32 %v561_v15, %v549_v54  ;;  %v618_v15 = vld [vmem:[#allocation7 + $0x1] ss:$4 sm:$0x3] }
  0xc7   :  { %v657_v20 = vperm.slane %v618_v15, 0  ;;  %v658_v21 = vperm.slane %v618_v15, 1 }
  0xc8   :  { %v632_v37 = vmul.f32 %v1706_v31, %v1706_v31 }
  0xcb   :  { %v550_v18 = vpop.f32.mrf.mxu2 }
  0xcc   :  { %v563_v19 = vpop.f32.mrf.mxu3 }
  0xdb   :  { %v574_v24 = vpop.f32.mrf.mxu0 }
  0xdc   :  { %v575_v57 = vadd.f32 %v574_v24, %v190_v22  ;;  %v587_v25 = vpop.f32.mrf.mxu1 }
  0xde   :  { %v588_v26 = vadd.f32 %v587_v25, %v575_v57  ;;  %v664_v57 = vperm.slane %v620_v17, 0  ;;  %v665_v25 = vperm.slane %v620_v17, 1 }
  0xe3   :  { %v600_v27 = vpop.f32.mrf.mxu2  ;;  %v576_v29 = vpop.f32.mrf.mxu0 }
  0xe4   :  { %v601_v58 = vadd.f32 %v600_v27, %v588_v26  ;;  %v613_v28 = vpop.f32.mrf.mxu3  ;;  %v589_v30 = vpop.f32.mrf.mxu1 }
  0xe6   :  { %v1708_v32 = vadd.f32 %v613_v28, %v601_v58 }
  0xe8   :  { %v621_v33 = vadd.f32 %v1708_v32, %v1706_v31  ;;  %v633_v36 = vmul.f32 %v1708_v32, %v1708_v32 }
  0xea   :  { %622 = vadd.xlane.f32.xlu0 %v621_v33  ;;  %v634_v38 = vadd.f32 %v633_v36, %v632_v37  ;;  %v1429_v33 = vld [vmem:[#allocation10] ss:$0 sm:$0xff] }
  0xeb   :  { %v602_v34 = vpop.f32.mrf.mxu2 }
  0xec   :  { %v615_v35 = vpop.f32.mrf.mxu3 }
  0xf2   :  { %635 = vadd.xlane.f32.xlu0 %v634_v38 }
 0x15d   :  { %v623_v56 = vpop.xlane.xlu0 %622 }
 0x15e   :  { %v631_v1 = vmul.f32 %v630_v59, %v623_v56  ;;  %v1409_v56 = vld [vmem:[#allocation11 + $0x8] sm:$0xff] }
 0x15f   :  { %948 = vmatpush.bf16.msra.mxu2 %v1409_v56 }
 0x160   :  { %v638_v5 = vmul.f32 %v631_v1, %v631_v1  ;;  %v641_v18 = vsub.f32 %v1706_v31, %v631_v1  ;;  %v642_v19 = vsub.f32 %v1708_v32, %v631_v1 }
 0x163   :  { %949 = vmatpush.bf16.msra.mxu2 %v1408_v62 }
 0x165   :  { %v636_v2 = vpop.xlane.xlu0 %635 }
 0x166   :  { %v637_v6 = vmul.f32 %v636_v2, %v630_v59 }
 0x168   :  { %v639_v7 = vsub.f32 %v637_v6, %v638_v5 }
 0x16a   :  { %v640_v8 = vmax.f32 %v639_v7, 0.0 }
 0x16c   :  { %v643_v9 = vadd.f32 1e-05, %v640_v8 }
 0x16e   :  { %1435 = vrsqrt.f32 %v643_v9  ;;  %vm650_vm2 = vweird.f32 %v643_v9 }
 0x16f   :  { %1437 = vrcp.f32 %v1630_v41 }
 0x174   :  { %v1436_v10 = vpop.eup %1435 }
 0x175   :  { %v645_v11 = vmul.f32 %v1436_v10, %v643_v9  ;;  %vm651_vm1 = vweird.f32 %v1436_v10  ;;  %v1438_v43 = vpop.eup %1437 }
 0x176   :  { %vm652_vm3 = vmor %vm650_vm2, %vm651_vm1  ;;  %v839_v44 = vmul.f32 128.0, %v1438_v43  ;;  %vm843_vm6 = vweird.f32 %v1438_v43 }
 0x177   :  { %v646_v12 = vmul.f32 %v1436_v10, %v645_v11  ;;  %v1430_v11 = vld [vmem:[#allocation10 + $0x1] ss:$0 sm:$0xff] }
 0x178   :  { %v840_v46 = vsub.f32 1.0, %v839_v44 }
 0x179   :  { %v647_v13 = vmul.f32 0.5, %v646_v12 }
 0x17a   :  { %v841_v48 = vmul.f32 %v1438_v43, %v840_v46 }
 0x17b   :  { %v648_v14 = vsub.f32 1.5, %v647_v13 }
 0x17c   :  { %v842_v50 = vadd.f32 %v1438_v43, %v841_v48 }
 0x17d   :  { %v649_v16 = vmul.f32 %v1436_v10, %v648_v14  ;;  %v1431_v14 = vld [vmem:[#allocation10 + $0x2] ss:$0 sm:$0xff] }
 0x17e   :  { %v844_v53 = vsel %vm843_vm6, %v1438_v43, %v842_v50 }
 0x17f   :  { %v653_v22 = vsel %vm652_vm3, %v1436_v10, %v649_v16 }
 0x180   :  { %v654_v23 = vmul.f32 %v653_v22, %v641_v18  ;;  %v655_v24 = vmul.f32 %v653_v22, %v642_v19 }
 0x182   :  { %v661_v60 = vmul.f32 %v657_v20, %v654_v23  ;;  %v662_v26 = vmul.f32 %v658_v21, %v655_v24  ;;  %v1432_v20 = vld [vmem:[%s1730_s6] ss:$0 sm:$0xff] }
 0x184   :  { %v668_v54 = vadd.f32 %v664_v57, %v661_v60  ;;  %v669_v27 = vadd.f32 %v665_v25, %v662_v26 }
 0x186   :  { %vm670_vm4 = vcmp.ge.f32.partialorder %v668_v54, 0.0  ;;  %v672_v58 = vmul.f32 0.05, %v668_v54  ;;  %vm671_vm5 = vcmp.ge.f32.partialorder %v669_v27, 0.0  ;;  %v673_v28 = vmul.f32 0.05, %v669_v27 }
 0x188   :  { %v674_v29 = vsel %vm670_vm4, %v668_v54, %v672_v58  ;;  %v675_v30 = vsel %vm671_vm5, %v669_v27, %v673_v28 }
 0x189   :  { %v676_v31 = vpack.c.bf16 %v674_v29, %v674_v29  ;;  %v677_v32 = vpack.c.bf16 %v675_v30, %v675_v30 }
 0x18b   :  { %816 = vmatmul.bf16.vlgmr.msra.gmra.mxu0 %v676_v31  ;;  %829 = vmatmul.bf16.vlgmr.msra.gmra.mxu1 %v677_v32 }
 0x208   :  { %v817_v34 = vpop.f32.mrf.mxu0  ;;  %v830_v35 = vpop.f32.mrf.mxu1 }
 0x209   :  { %v818_v36 = vadd.f32 %v1429_v33, %v817_v34 }
 0x20b   :  { %v831_v37 = vadd.f32 %v830_v35, %v818_v36 }
 0x20d   :  { %836 = vadd.xlane.f32.xlu1 %v831_v37  ;;  %v846_v40 = vmul.f32 %v831_v37, %v831_v37 }
 0x210   :  { %v819_v38 = vpop.f32.mrf.mxu0  ;;  %v832_v39 = vpop.f32.mrf.mxu1 }
 0x215   :  { %847 = vadd.xlane.f32.xlu1 %v846_v40 }
 0x280   :  { %v837_v52 = vpop.xlane.xlu1 %836 }
 0x281   :  { %v845_v59 = vmul.f32 %v844_v53, %v837_v52 }
 0x283   :  { %v850_v63 = vmul.f32 %v845_v59, %v845_v59  ;;  %v853_v10 = vsub.f32 %v831_v37, %v845_v59 }
 0x288   :  { %v848_v61 = vpop.xlane.xlu1 %847 }
 0x289   :  { %v849_v0 = vmul.f32 %v848_v61, %v844_v53 }
 0x28b   :  { %v851_v1 = vsub.f32 %v849_v0, %v850_v63 }
 0x28d   :  { %v852_v2 = vmax.f32 %v851_v1, 0.0 }
 0x28f   :  { %v854_v3 = vadd.f32 1e-05, %v852_v2 }
 0x291   :  { %1439 = vrsqrt.f32 %v854_v3  ;;  %vm861_vm8 = vweird.f32 %v854_v3 }
 0x297   :  { %v1440_v4 = vpop.eup %1439 }
 0x298   :  { %v856_v5 = vmul.f32 %v1440_v4, %v854_v3  ;;  %vm862_vm7 = vweird.f32 %v1440_v4 }
 0x299   :  { %vm863_vm9 = vmor %vm861_vm8, %vm862_vm7 }
 0x29a   :  { %v857_v6 = vmul.f32 %v1440_v4, %v856_v5 }
 0x29c   :  { %v858_v7 = vmul.f32 0.5, %v857_v6 }
 0x29e   :  { %v859_v8 = vsub.f32 1.5, %v858_v7 }
 0x2a0   :  { %v860_v9 = vmul.f32 %v1440_v4, %v859_v8 }
 0x2a2   :  { %v864_v12 = vsel %vm863_vm9, %v1440_v4, %v860_v9 }
 0x2a3   :  { %v865_v13 = vmul.f32 %v864_v12, %v853_v10 }
 0x2a5   :  { %v867_v15 = vmul.f32 %v1430_v11, %v865_v13 }
 0x2a7   :  { %v869_v16 = vadd.f32 %v1431_v14, %v867_v15 }
 0x2a9   :  { %vm870_vm10 = vcmp.ge.f32.partialorder %v869_v16, 0.0  ;;  %v871_v17 = vmul.f32 0.05, %v869_v16 }
 0x2ab   :  { %v872_v18 = vsel %vm870_vm10, %v869_v16, %v871_v17 }
 0x2ac   :  { %v873_v19 = vpack.c.bf16 %v872_v18, %v872_v18 }
 0x2ae   :  { %950 = vmatmul.bf16.vlgmr.msra.gmra.mxu2 %v873_v19 }
 0x331   :  { %v951_v21 = vpop.f32.mrf.mxu2 }
 0x332   :  { %v952_v22 = vadd.f32 %v1432_v20, %v951_v21 }
 0x334   :  { %955 = vst [vmem:[#allocation13] sm:$0xff] %v952_v22 }
 0x335   :  { %966 = dma.vmem_to_hbm [thread:$0]  %s962_s9, 128, %s964_s12, [#allocation4]  }
 0x339   :  { %v953_v23 = vpop.f32.mrf.mxu2 }
 0x33a   :  { %1617 = dma.done.wait [#allocation4], 128  }
 0x33b   :  { %1618 = vsyncadd [#allocation4], 4294967168 }
 0x33c   :  { %971 = vsyncpa [#allocation3], 1 }
 0x33d   :  { %972 = vsyncpa [#allocation6], 1 }
 0x33e   :  { %973 = vsyncpa [#allocation9], 1 }
 0x33f   :  { %974 = vsyncpa [#allocation12], 1 }
 0x340   :  { %975 = vsyncpa [#allocation4], 1 }

</bundles_post_ra>
